<compile_context>
chip_gen: v7x
topology: tpu7x:2x2x1
jax: 0.10.0
libtpu: 0.0.40
codegen_flags: <defaults>
</compile_context>

<pallas_src>
import jax
import jax.numpy as jnp
from jax import lax
from jax.experimental import pallas as pl
from jax.experimental.pallas import tpu as pltpu

_EPS = 1e-12           # torch.nn.functional.normalize default eps
_INV_EPS = 1.0 / _EPS  # clamp on rsqrt  <=>  clamp_min(eps) on the norm


def _clf_norm_kernel(x_ref, w_ref, xs_ref, ws_ref, o_ref):
    # NT contraction on the MXU (no weight transpose), f32 accumulation.
    o = lax.dot_general(
        x_ref[...], w_ref[...],
        dimension_numbers=(((1,), (1,)), ((), ())),
        preferred_element_type=jnp.float32)                       # [bt, ct] f32
    # Post-matmul row x column rescale: only 2*bt*ct VPU mults per grid step
    # (the inverse norms and 1/tau were precomputed in the wrapper).
    o_ref[...] = ((o * xs_ref[...]) * ws_ref[...]).astype(o_ref.dtype)


def _clf_linear_kernel(x_ref, w_ref, o_ref):
    o_ref[...] = lax.dot_general(
        x_ref[...], w_ref[...],
        dimension_numbers=(((1,), (1,)), ((), ())),
        preferred_element_type=jnp.float32).astype(o_ref.dtype)


def _round_up(x, m):
    return ((x + m - 1) // m) * m


def _maybe_buffered_spec(shape, index_map, extra_buffering):
    """BlockSpec, with 3-deep pipelining on the streamed operand if supported."""
    if extra_buffering and hasattr(pl, "Buffered"):
        try:
            return pl.BlockSpec(shape, index_map, pipeline_mode=pl.Buffered(3))
        except TypeError:  # older jax without pipeline_mode kwarg
            pass
    return pl.BlockSpec(shape, index_map)


def clf_layer(x, w, tau=0.1, *, b_tile=512, c_tile=256,
              matmul_dtype=jnp.bfloat16):
    """ClfLayer forward.

    x: [B, emb_dim], w: [n_classes, emb_dim] (fc.weight, no bias).
      tau > 0 : l2norm(x) @ l2norm(w).T / tau
      tau <= 0: x @ w.T
    Returns [B, n_classes] float32.
    """
    B, D = x.shape
    C, D2 = w.shape
    assert D == D2, "feature dims must match"
    normalize = tau > 0

    x32 = x.astype(jnp.float32)
    w32 = w.astype(jnp.float32)

    inv_xn = inv_wn = None
    if normalize:
        # 1 / max(||row||, eps) == min(rsqrt(sum sq), 1/eps); fold 1/tau into x.
        inv_xn = (jnp.minimum(lax.rsqrt(jnp.sum(x32 * x32, axis=1, keepdims=True)),
                              _INV_EPS) * (1.0 / float(tau)))          # [B, 1]
        inv_wn = jnp.minimum(lax.rsqrt(jnp.sum(w32 * w32, axis=1, keepdims=True)),
                             _INV_EPS).T                               # [1, C]

    # Matmul operands in (typically) bf16 so both the MXU and the HBM stream
    # run at full rate; the f32 inverse-norm scales are applied after the dot.
    xk = x32.astype(matmul_dtype)
    wk = w32.astype(matmul_dtype)
    itm = jnp.dtype(matmul_dtype).itemsize
    b_align = 8 * max(1, 4 // itm)      # sublane packing: 8 (f32) / 16 (bf16)

    # --- tile selection: pad-to-alignment, never one giant un-pipelined tile ---
    n_b = pl.cdiv(B, b_tile)
    bt = _round_up(pl.cdiv(B, n_b), b_align)
    n_c = pl.cdiv(C, c_tile)
    ct = _round_up(pl.cdiv(C, n_c), 128)

    def _vmem_bytes(bt_, ct_, extra_w=0):
        # double-buffered operand tiles + double-buffered f32 output tile
        # + f32 scale vectors (+ optional third weight buffer).
        return ((2 + extra_w) * ct_ * D * itm + 2 * bt_ * D * itm
                + 2 * bt_ * ct_ * 4 + 2 * (bt_ + ct_) * 4)

    budget = 28 * (1 << 20)   # accounted tiles; explicit limit below has slack
    while _vmem_bytes(bt, ct) > budget and ct > 128:
        ct = max(128, _round_up(ct // 2, 128))
    while _vmem_bytes(bt, ct) > budget and bt > b_align:
        bt = max(b_align, _round_up(bt // 2, b_align))
    # Re-balance so the last tile isn't mostly padding.
    n_b = pl.cdiv(B, bt)
    bt = _round_up(pl.cdiv(B, n_b), b_align)
    n_c = pl.cdiv(C, ct)
    ct = _round_up(pl.cdiv(C, n_c), 128)

    # v7x megacore: give ("parallel","parallel") >= 2 instances when possible.
    if n_b == 1 and n_c == 1:
        ct_half = _round_up(pl.cdiv(C, 2), 128)
        bt_half = _round_up(pl.cdiv(B, 2), b_align)
        if C > ct_half:
            ct, n_c = ct_half, 2
        elif B > bt_half:
            bt, n_b = bt_half, 2

    B_pad, C_pad = n_b * bt, n_c * ct
    if B_pad != B:
        xk = jnp.pad(xk, ((0, B_pad - B), (0, 0)))
        if normalize:
            inv_xn = jnp.pad(inv_xn, ((0, B_pad - B), (0, 0)))
    if C_pad != C:
        wk = jnp.pad(wk, ((0, C_pad - C), (0, 0)))
        if normalize:
            inv_wn = jnp.pad(inv_wn, ((0, 0), (0, C_pad - C)))

    # Triple-buffer the streamed weight tiles when the inner loop is long
    # enough and VMEM headroom remains (hides DMA jitter at tile boundaries).
    buffer_w = (n_c >= 3) and (_vmem_bytes(bt, ct, extra_w=1) <= budget)

    x_spec = pl.BlockSpec((bt, D), lambda i, j: (i, 0))       # resident per i
    w_spec = _maybe_buffered_spec((ct, D), lambda i, j: (j, 0), buffer_w)  # streamed
    out_spec = pl.BlockSpec((bt, ct), lambda i, j: (i, j))    # lane-dense output

    if normalize:
        kernel = _clf_norm_kernel
        in_specs = [x_spec, w_spec,
                    pl.BlockSpec((bt, 1), lambda i, j: (i, 0)),
                    pl.BlockSpec((1, ct), lambda i, j: (0, j))]
        args = (xk, wk, inv_xn, inv_wn)
    else:
        kernel = _clf_linear_kernel
        in_specs = [x_spec, w_spec]
        args = (xk, wk)

    out = pl.pallas_call(
        kernel,
        out_shape=jax.ShapeDtypeStruct((B_pad, C_pad), jnp.float32),
        grid_spec=pltpu.PrefetchScalarGridSpec(
            num_scalar_prefetch=0,
            grid=(n_b, n_c),
            in_specs=in_specs,
            out_specs=out_spec,
        ),
        compiler_params=pltpu.CompilerParams(
            # Both axes independent -> shardable across v7x's 2 TensorCores.
            dimension_semantics=("parallel", "parallel"),
            # Explicit, generation-aware limit: > v5e's 16 MiB scoped default,
            # comfortably under v7x's 64 MiB physical VMEM.
            vmem_limit_bytes=48 * (1 << 20),
        ),
    )(*args)

    if B_pad != B or C_pad != C:
        out = out[:B, :C]
    return out


def _reference(x, w, tau):
    if tau <= 0:
        return x @ w.T
    xn = x / jnp.maximum(jnp.linalg.norm(x, axis=1, keepdims=True), _EPS)
    wn = w / jnp.maximum(jnp.linalg.norm(w, axis=1, keepdims=True), _EPS)
    return (xn @ wn.T) / tau


if __name__ == "__main__":
    key = jax.random.PRNGKey(0)

    # (B, emb_dim, n_classes, tau, matmul_dtype, atol, rtol)
    #   1) module-like small shape (normalized branch, bf16 path),
    #   2) ragged B/C exercising padding + the tiled (B, C) grid,
    #   3) f32 fallback path with tight tolerance,
    #   4) tau <= 0 plain-linear branch.
    cases = [
        (4,   32,  128,  0.1, jnp.bfloat16, 5e-2, 5e-2),
        (300, 64,  1000, 0.1, jnp.bfloat16, 5e-2, 5e-2),
        (64,  128, 512,  0.1, jnp.float32,  2e-4, 2e-4),
        (4,   32,  128,  0.0, jnp.bfloat16, 1e-2, 1e-2),
    ]
    for B, D, C, tau, mmdt, atol, rtol in cases:
        key, kx, kw = jax.random.split(key, 3)
        x = jax.random.normal(kx, (B, D), dtype=jnp.float32)
        w = jax.random.normal(kw, (C, D), dtype=jnp.float32) * 0.02  # fc.weight
        out = jax.block_until_ready(clf_layer(x, w, tau=tau, matmul_dtype=mmdt))
        ref = _reference(x, w, tau)
        assert out.shape == (B, C)
        assert jnp.allclose(out, ref, atol=atol, rtol=rtol), (
            f"mismatch vs reference for B={B} D={D} C={C} tau={tau} dtype={mmdt}")

    print("KERNEL_OK")
</pallas_src>

<mosaic_0001>
module attributes {stable_mosaic.version = 11 : i64} {
  func.func @_clf_norm_kernel(%arg0: i32, %arg1: i32, %arg2: memref<16x32xbf16, #tpu.memory_space<vmem>>, %arg3: memref<128x32xbf16, #tpu.memory_space<vmem>>, %arg4: memref<16x1xf32, #tpu.memory_space<vmem>>, %arg5: memref<1x128xf32, #tpu.memory_space<vmem>>, %arg6: memref<16x128xf32, #tpu.memory_space<vmem>>) attributes {dimension_semantics = [#tpu.dimension_semantics<parallel>, #tpu.dimension_semantics<parallel>], iteration_bounds = array<i64: 1, 1>, scalar_prefetch = 0 : i64, scratch_operands = 0 : i64, tpu.core_type = #tpu.core_type<tc>, window_params = [{transform_indices = @transform_0, window_bounds = array<i64: 16, 32>}, {transform_indices = @transform_1, window_bounds = array<i64: 128, 32>}, {transform_indices = @transform_2, window_bounds = array<i64: 16, 1>}, {transform_indices = @transform_3, window_bounds = array<i64: 1, 128>}, {transform_indices = @transform_4, window_bounds = array<i64: 16, 128>}]} {
    %c0 = arith.constant 0 : index
    %c0_0 = arith.constant 0 : index
    %0 = vector.load %arg2[%c0, %c0_0] : memref<16x32xbf16, #tpu.memory_space<vmem>>, vector<16x32xbf16>
    %c0_1 = arith.constant 0 : index
    %c0_2 = arith.constant 0 : index
    %1 = vector.load %arg3[%c0_1, %c0_2] : memref<128x32xbf16, #tpu.memory_space<vmem>>, vector<128x32xbf16>
    %cst = arith.constant dense<0.000000e+00> : vector<16x128xf32>
    %2 = tpu.matmul %0, %1, %cst {dimension_numbers = #tpu.dot_dimension_numbers<[1], [1], [0], [0], [0, 0, 1, 0], [], []>} : vector<16x32xbf16>, vector<128x32xbf16>, vector<16x128xf32> -> vector<16x128xf32>
    %c0_3 = arith.constant 0 : index
    %c0_4 = arith.constant 0 : index
    %3 = vector.load %arg4[%c0_3, %c0_4] : memref<16x1xf32, #tpu.memory_space<vmem>>, vector<16x1xf32>
    %4 = vector.broadcast %3 : vector<16x1xf32> to vector<16x128xf32>
    %5 = arith.mulf %2, %4 : vector<16x128xf32>
    %c0_5 = arith.constant 0 : index
    %c0_6 = arith.constant 0 : index
    %6 = vector.load %arg5[%c0_5, %c0_6] : memref<1x128xf32, #tpu.memory_space<vmem>>, vector<1x128xf32>
    %7 = vector.broadcast %6 : vector<1x128xf32> to vector<16x128xf32>
    %8 = arith.mulf %5, %7 : vector<16x128xf32>
    %c0_7 = arith.constant 0 : index
    %c0_8 = arith.constant 0 : index
    %9 = vector.load %arg6[%c0_7, %c0_8] : memref<16x128xf32, #tpu.memory_space<vmem>>, vector<16x128xf32>
    tpu.vector_store %arg6[%c0_7, %c0_8], %8 {strides = array<i32>} : memref<16x128xf32, #tpu.memory_space<vmem>>, vector<16x128xf32>,
    return
  }
  func.func @transform_0(%arg0: i32, %arg1: i32) -> (i32, i32) {
    %c0_i32 = arith.constant 0 : i32
    %c0_i32_0 = arith.constant 0 : i32
    return %arg0, %c0_i32 : i32, i32
  }
  func.func @transform_1(%arg0: i32, %arg1: i32) -> (i32, i32) {
    %c0_i32 = arith.constant 0 : i32
    %c0_i32_0 = arith.constant 0 : i32
    return %arg1, %c0_i32 : i32, i32
  }
  func.func @transform_2(%arg0: i32, %arg1: i32) -> (i32, i32) {
    %c0_i32 = arith.constant 0 : i32
    %c0_i32_0 = arith.constant 0 : i32
    return %arg0, %c0_i32 : i32, i32
  }
  func.func @transform_3(%arg0: i32, %arg1: i32) -> (i32, i32) {
    %c0_i32 = arith.constant 0 : i32
    %c0_i32_0 = arith.constant 0 : i32
    return %c0_i32, %arg1 : i32, i32
  }
  func.func @transform_4(%arg0: i32, %arg1: i32) -> (i32, i32) {
    %c0_i32 = arith.constant 0 : i32
    return %arg0, %arg1 : i32, i32
  }
}

</mosaic_0001>

<bundles_post_ra>
// kernel: tpu_custom_call.1
= control target key start
LH: loop header
LB: loop body
LE: loop exit
PB: predicated region body
PF: predicated region fallthrough
CT: control target
= control target key end

     0   :  { %v272_v1 = vmov 0.0   ;;  %vm82_vm0 = vcmask 261120   ;;  %vm273_vm1 = vmmov 0   ;;  %v274_v6 = vmov 0   ;;  %s360_s0 = inlined_call_operand.vmem [shape: bf16[16,32], index: 0, kind: input, shape index: {}]   ;;  %s361_s1 = inlined_call_operand.vmem [shape: bf16[128,32], index: 1, kind: input, shape index: {}]   ;;  %s362_s2 = inlined_call_operand.vmem [shape: f32[16,1], index: 2, kind: input, shape index: {}]   ;;  %s363_s3 = inlined_call_operand.vmem [shape: f32[1,128], index: 3, kind: input, shape index: {}]   ;;  %s364_s4 = inlined_call_operand.hbm [shape: f32[16,128], index: 4, kind: output, shape index: {}]  }
   0x1   :  { %v239_v0 = vld [vmem:[%s361_s1] sm:$0xff]   ;;  %212 = vmatprep.subr.bf16.mxu0 %v272_v1  ;;  %v240_v3 = vld [vmem:[%s361_s1 + $0x8] sm:$0xff]   ;;  %228 = vmatprep.mubr.msk.bf16.mxu0 %vm273_vm1, %v272_v1 }
   0x2   :  { %v87_v2 = vsel %vm82_vm0, %v239_v0, 0  ;;  %v90_v4 = vsel %vm82_vm0, %v240_v3, 0  ;;  %v151_v5 = vld [vmem:[%s362_s2] sm:$0xff]  ;;  %238 = vset.pattern.permute.xlu0 %v274_v6 }
   0x3   :  { %213 = vmatpush3.bf16.xpose.msra.mxu0 %v87_v2 }
   0x4   :  { %214 = vmatprep.subr.bf16.mxu0 %v272_v1 }
   0x5   :  { %9 = vsyncpa [#allocation3], 0  ;;  %155 = vperm.xlu0 %238, %v151_v5   ;;  %v241_v7 = vld [vmem:[%s361_s1 + $0x10] sm:$0xff]   ;;  %v152_v8 = vld [vmem:[%s362_s2 + $0x8] sm:$0xff]  ;;  %s275_s12 = smov [#allocation2]  }
   0x6   :  { %v93_v9 = vsel %vm82_vm0, %v241_v7, 0  ;;  %v242_v10 = vld [vmem:[%s361_s1 + $0x18] sm:$0xff]   ;;  %v243_v12 = vld [vmem:[%s361_s1 + $0x20] sm:$0xff]   ;;  %v244_v14 = vld [vmem:[%s361_s1 + $0x28] sm:$0xff]   ;;  %s181_s13 = sshll.u32 %s275_s12, 4  ;;  %s182_s13 = int_to_ptr.vmem [resolvable:$true] %s181_s13 }
   0x7   :  { %v96_v11 = vsel %vm82_vm0, %v242_v10, 0  ;;  %v99_v13 = vsel %vm82_vm0, %v243_v12, 0  ;;  %v102_v15 = vsel %vm82_vm0, %v244_v14, 0  ;;  %v245_v16 = vld [vmem:[%s361_s1 + $0x30] sm:$0xff]   ;;  %v246_v18 = vld [vmem:[%s361_s1 + $0x38] sm:$0xff]   ;;  %v247_v20 = vld [vmem:[%s360_s0] sm:$0xff]   ;;  %p253_p1 = scmp.lt.s32.totalorder %s182_s13, %s182_s13 }
   0x8   :  { %v105_v17 = vsel %vm82_vm0, %v245_v16, 0  ;;  %v108_v19 = vsel %vm82_vm0, %v246_v18, 0  ;;  %v202_v23 = vld [vmem:[%s363_s3] ss:$0 sm:$0xff]  ;;  %s248_s0 = scalar_lea.vmem %s182_s13, 256 }
   0x9   :  { %160 = vperm.xlu0 %238, %v152_v8   ;;  %p249_p0 = scmp.ne.s32.totalorder %s182_s13, %s248_s0  ;;  %p254_p2 = scmp.lt.s32.totalorder %s248_s0, %s248_s0 }
   0xb   :  { %215 = vmatpush3.bf16.xpose.msra.mxu0 %v90_v4  ;;  %p255_p3 = por %p254_p2, %p253_p1 }
   0xc   :  { %216 = vmatprep.subr.bf16.mxu0 %v272_v1 }
   0xd   :  { %p256_p4 = pnand %p255_p3, %p249_p0 }
  0x13   :  { %217 = vmatpush3.bf16.xpose.msra.mxu0 %v93_v9 }
  0x14   :  { %218 = vmatprep.subr.bf16.mxu0 %v272_v1 }
  0x1b   :  { %219 = vmatpush3.bf16.xpose.msra.mxu0 %v96_v11 }
  0x1c   :  { %220 = vmatprep.subr.bf16.mxu0 %v272_v1 }
  0x23   :  { %221 = vmatpush3.bf16.xpose.msra.mxu0 %v99_v13 }
  0x24   :  { %222 = vmatprep.subr.bf16.mxu0 %v272_v1 }
  0x2b   :  { %223 = vmatpush3.bf16.xpose.msra.mxu0 %v102_v15 }
  0x2c   :  { %224 = vmatprep.subr.bf16.mxu0 %v272_v1 }
  0x33   :  { %225 = vmatpush3.bf16.xpose.msra.mxu0 %v105_v17 }
  0x34   :  { %226 = vmatprep.subr.bf16.mxu0 %v272_v1 }
  0x3b   :  { %227 = vmatpush3.bf16.xpose.msra.mxu0 %v108_v19 }
  0x42   :  { %229 = vmatmul.mubr.msk.bf16.vlgmr.msra.gmra.mrb[0].mxu0 %vm82_vm0, %v247_v20 }
  0x84   :  { %v156_v21 = vpop.permute.xlu0 %155 }
  0x88   :  { %v161_v26 = vpop.permute.xlu0 %160 }
 0x115   :  { %v144_v22 = vpop.f32.mrb[0].mxu0 }
 0x116   :  { %v163_v24 = vmul.f32 %v156_v21, %v144_v22  ;;  %v230_v25 = vpop.f32.mrb[1].mxu0 }
 0x117   :  { %v147_v27 = vpop.f32.mrb[2].mxu0 }
 0x118   :  { %v172_v28 = vmul.f32 %v202_v23, %v163_v24  ;;  %v164_v29 = vmul.f32 %v161_v26, %v147_v27  ;;  %v231_v30 = vpop.f32.mrb[3].mxu0 }
 0x11a   :  { %174 = vst [vmem:[#allocation2] sm:$0xff] %v172_v28  ;;  %v173_v31 = vmul.f32 %v202_v23, %v164_v29 }
 0x11c   :  { %175 = vst [vmem:[#allocation2 + $0x8] sm:$0xff] %v173_v31 }
 0x11d   :  { %259 = shalt.err (!%p256_p4)
}
 0x11e   :  { %s260_s14 = scalar_lea.hbm %s364_s4, 256 }
 0x11f   :  { %p261_p5 = scmp.ne.s32.totalorder %s364_s4, %s260_s14  ;;  %p264_p6 = scmp.lt.u32.totalorder %s260_s14, %s364_s4 }
 0x121   :  { %p266_p7 = pnand %p264_p6, %p261_p5 }
 0x123   :  { %269 = shalt.err (!%p266_p7)
}
 0x124   :  { %s276_s19 = smov 128   ;;  %s277_s20 = smov 8  }
 0x125   :  { %187 = dma.vmem_to_hbm [thread:$0]  %s182_s13, 256, %s364_s4, [#allocation3], %s276_s19, %s276_s19, %s277_s20  }
 0x126   :  { %270 = dma.done.wait [#allocation3], 256  }
 0x127   :  { %271 = vsyncadd [#allocation3], 4294967040 }
 0x128   :  { %191 = vsyncpa [#allocation3], 1 }

</bundles_post_ra>
